<compile_context>
chip_gen: v7x
topology: tpu7x:2x2x1
jax: 0.10.0
libtpu: 0.0.40
codegen_flags: <defaults>
</compile_context>

<pallas_src>
import functools

import numpy as np
import jax
import jax.numpy as jnp
from jax import lax
from jax.experimental import pallas as pl
from jax.experimental.pallas import tpu as pltpu

LANES = 128
SUBLANES = 8
MAX_BLOCK_BYTES = 4 * 1024 * 1024     # one HBM->VMEM tile (x2 double-buffered = 8 MiB)
CHUNK_TARGET_ELEMS = 16 * 1024        # ~16 live f32 vregs per streaming chunk
DIRECT_MIN_ELEMS = 16 * 1024          # below this the slab copy cost is negligible
VMEM_LIMIT_BYTES = 32 * 1024 * 1024   # explicit scoped-VMEM budget (safe on v5e/v6e/v7x)


def _sublanes_for(dtype):
    # f32 -> 8 rows, bf16 -> 16, int8/fp8 -> 32 (sublane packing granularity).
    return max(SUBLANES, 32 // np.dtype(dtype).itemsize)


def _choose_block_rows(row_counts, sub, max_rows, itemsize):
    """Largest sub-aligned block-row count whose per-weight padding waste stays small."""
    total = sum(row_counts)
    cap = min(max_rows, MAX_BLOCK_BYTES // (LANES * itemsize))
    cap = max(sub, (cap // sub) * sub)

    def overhead(tr):
        return sum(-(-r // tr) * tr - r for r in row_counts)

    allow = overhead(sub) + max(total // 8, sub)
    tr = cap
    while tr > sub and overhead(tr) > allow:
        tr = max(sub, (tr // 2 // sub) * sub)
    return tr


def _pick_direct_rows(m, n, itemsize, sub, max_rows, max_bytes):
    """Largest sub-aligned divisor of m keeping one (tm, n) block <= max_bytes."""
    best = None
    tm = sub
    limit = min(m, max_rows)
    while tm <= limit:
        if m % tm == 0 and tm * n * itemsize <= max_bytes:
            best = tm
        tm += sub
    return best


def _pick_chunk_rows(tr, n_lanes, sub):
    """Largest sub-aligned divisor of tr with <= CHUNK_TARGET_ELEMS elems per chunk."""
    best = sub
    c = sub
    while c <= tr:
        if tr % c == 0 and c * n_lanes <= CHUNK_TARGET_ELEMS:
            best = c
        c += sub
    return best


def _norm_sweep_kernel(blk_ref, wid_ref, first_ref, last_ref, x_ref, o_ref, acc_ref,
                       *, p, chunk_rows, unroll):
    """One grid step = one (tr, n_lanes) row-block of exactly one weight segment.

    grid = (num_cores, blocks_per_core): axis 0 is "parallel" (v7x 2-TC split),
    axis 1 is the sequential HBM sweep.  Scalar-prefetched tables (flattened
    over the grid) give: blk = which row-block to DMA (consumed by the
    index_map only), wid = which weight it belongs to, first/last = segment
    boundaries (re-derived per core, so a weight straddling the core boundary
    produces two partials that are summed in JAX).
    """
    del blk_ref  # used only by the input index_map
    npc = pl.num_programs(1)
    g = pl.program_id(0) * npc + pl.program_id(1)

    # Zero this core's resident output row at the start of its range.
    @pl.when(pl.program_id(1) == 0)
    def _():
        o_ref[...] = jnp.zeros_like(o_ref)

    # New weight segment -> reset the vreg-shaped accumulator.
    @pl.when(first_ref[g] == 1)
    def _():
        acc_ref[...] = jnp.zeros_like(acc_ref)

    n_lanes = x_ref.shape[1]
    trip = x_ref.shape[0] // chunk_rows

    # Streaming reduction: small chunks keep the live set to a handful of vregs.
    def body(c, acc):
        r0 = pl.multiple_of(c * chunk_rows, chunk_rows)
        x = x_ref[pl.ds(r0, chunk_rows), :].astype(jnp.float32)
        part = x * x if p == 2 else jnp.abs(x)
        return acc + jnp.sum(
            part.reshape(chunk_rows // SUBLANES, SUBLANES, n_lanes), axis=0)

    zero = jnp.zeros((SUBLANES, n_lanes), jnp.float32)
    acc_ref[...] += lax.fori_loop(0, trip, body, zero, unroll=unroll)

    # Last block of a segment -> single cross-lane reduce, write its output lane.
    @pl.when(last_ref[g] == 1)
    def _():
        total = jnp.sum(acc_ref[...])
        lane = lax.broadcasted_iota(jnp.int32, o_ref.shape, 2)
        o_ref[...] = jnp.where(lane == wid_ref[g], total, o_ref[...])


def _run_sweep(x, blk, wid, first, last, n_out, tr, p, num_cores):
    """Run the table-driven sweep over a (rows, n_lanes) array; returns (n_out,) sums."""
    rows, n_lanes = x.shape
    assert rows % tr == 0
    nb = rows // tr
    assert len(blk) == nb
    sub = _sublanes_for(x.dtype)

    npc = -(-nb // num_cores)
    blk, wid, first, last = list(blk), list(wid), list(first), list(last)
    # Flush/reset at TensorCore range boundaries: a straddling weight produces one
    # partial per core; rows of the (num_cores, 1, n_out) output are summed in JAX.
    for c in range(1, num_cores):
        e = c * npc
        if e < nb:
            first[e] = 1
            last[e - 1] = 1
    pad = num_cores * npc - nb
    # Dummy grid entries re-read block 0 but never write (first=1, last=0).
    blk += [0] * pad
    wid += [0] * pad
    first += [1] * pad
    last += [0] * pad

    chunk = _pick_chunk_rows(tr, n_lanes, sub)
    trip = tr // chunk
    kernel = functools.partial(_norm_sweep_kernel, p=p, chunk_rows=chunk,
                               unroll=bool(trip <= 8))

    out = pl.pallas_call(
        kernel,
        out_shape=jax.ShapeDtypeStruct((num_cores, 1, n_out), jnp.float32),
        grid_spec=pltpu.PrefetchScalarGridSpec(
            num_scalar_prefetch=4,
            grid=(num_cores, npc),
            in_specs=[pl.BlockSpec(
                (tr, n_lanes),
                lambda c, i, blk_r, wid_r, fst_r, lst_r: (blk_r[c * npc + i], 0))],
            out_specs=pl.BlockSpec(
                (1, 1, n_out),
                lambda c, i, blk_r, wid_r, fst_r, lst_r: (c, 0, 0)),
            scratch_shapes=[pltpu.VMEM((SUBLANES, n_lanes), jnp.float32)],
        ),
        compiler_params=pltpu.CompilerParams(
            dimension_semantics=("parallel", "arbitrary"),
            vmem_limit_bytes=VMEM_LIMIT_BYTES),
    )(jnp.asarray(np.asarray(blk, np.int32)),
      jnp.asarray(np.asarray(wid, np.int32)),
      jnp.asarray(np.asarray(first, np.int32)),
      jnp.asarray(np.asarray(last, np.int32)),
      x)
    return jnp.sum(out, axis=(0, 1))  # (n_out,) per-weight sum(|w|**p)


def _direct_eligible(w, max_block_rows):
    """True if the weight can be swept in place (no pad/concat copy)."""
    if w.ndim != 2:
        return False
    m, n = w.shape
    if m * n < DIRECT_MIN_ELEMS or n < LANES or n % LANES != 0:
        return False
    sub = _sublanes_for(w.dtype)
    if m % sub != 0:
        return False
    itemsize = np.dtype(w.dtype).itemsize
    return _pick_direct_rows(m, n, itemsize, sub, max_block_rows, MAX_BLOCK_BYTES) is not None


def _direct_sums(w, p, max_block_rows, num_cores):
    """Zero-copy sweep over a single lane-aligned 2-D weight, read in place from HBM."""
    m, n = w.shape
    sub = _sublanes_for(w.dtype)
    itemsize = np.dtype(w.dtype).itemsize
    tm = _pick_direct_rows(m, n, itemsize, sub, max_block_rows, MAX_BLOCK_BYTES)
    nb = m // tm
    blk = list(range(nb))
    wid = [0] * nb
    first = [1] + [0] * (nb - 1)
    last = [0] * (nb - 1) + [1]
    return _run_sweep(w, blk, wid, first, last, 1, tm, p, num_cores)


def _slab_sums(weights, p, max_block_rows, num_cores):
    """Fused sweep over all weights of one dtype, concatenated into a (R, 128) slab."""
    dtype = weights[0].dtype
    itemsize = np.dtype(dtype).itemsize
    sub = _sublanes_for(dtype)
    rows = [max(1, -(-int(np.prod(w.shape)) // LANES)) for w in weights]
    tr = _choose_block_rows(rows, sub, max_block_rows, itemsize)

    chunks, blk, wid, first, last = [], [], [], [], []
    b = 0
    for j, (w, r) in enumerate(zip(weights, rows)):
        nbj = -(-r // tr)
        tot = nbj * tr * LANES
        numel = int(np.prod(w.shape))
        flat = jnp.pad(w.reshape(-1), (0, tot - numel))  # zeros are neutral for L1/L2
        chunks.append(flat.reshape(nbj * tr, LANES))
        blk += list(range(b, b + nbj))
        wid += [j] * nbj
        first += [1] + [0] * (nbj - 1)
        last += [0] * (nbj - 1) + [1]
        b += nbj

    slab = chunks[0] if len(chunks) == 1 else jnp.concatenate(chunks, axis=0)
    n_out = len(weights)
    if p == 1:
        # sum of L1 norms == L1 of the concatenation: drop per-weight bookkeeping.
        wid = [0] * len(wid)
        first = [1] + [0] * (len(first) - 1)
        last = [0] * (len(last) - 1) + [1]
        n_out = 1
    return _run_sweep(slab, blk, wid, first, last, n_out, tr, p, num_cores)


@functools.partial(jax.jit, static_argnames=("p", "max_block_rows", "num_cores"))
def _regularization_loss(weights, weight_decay, p, max_block_rows, num_cores):
    sums = []
    slab_by_dtype = {}
    for w in weights:
        if _direct_eligible(w, max_block_rows):
            # Large lane-aligned 2-D weights: read in place, no slab copy.
            sums.append(_direct_sums(w, p, max_block_rows, num_cores))
        else:
            # Small / oddly shaped weights: one fused slab sweep per dtype (no upcast).
            slab_by_dtype.setdefault(np.dtype(w.dtype), []).append(w)
    for grp in slab_by_dtype.values():
        sums.append(_slab_sums(grp, p, max_block_rows, num_cores))
    per_weight = sums[0] if len(sums) == 1 else jnp.concatenate(sums)
    per_weight = jnp.sqrt(per_weight) if p == 2 else per_weight
    return weight_decay.astype(jnp.float32) * jnp.sum(per_weight)


def get_weight(named_params):
    """Mirror of Regularization.get_weight: keep params with 'dec' and 'weight'."""
    return [(name, w) for name, w in named_params
            if ('dec' in name) and ('weight' in name)]


def regularization_forward(named_params, weight_decay, p=2, max_block_rows=8192,
                           num_cores=2):
    """Mirror of Regularization.forward / regularization_loss."""
    if weight_decay < 0:
        raise ValueError('param weight_decay can not <0')
    weight_list = get_weight(named_params)
    if not weight_list:
        return jnp.float32(weight_decay) * jnp.float32(0.0)
    weights = tuple(w for _, w in weight_list)
    return _regularization_loss(weights, jnp.float32(weight_decay), p,
                                max_block_rows, num_cores)


if __name__ == "__main__":
    key = jax.random.PRNGKey(0)
    k = jax.random.split(key, 7)

    # Synthetic "model.named_parameters()" for a small Conv2d autoencoder.
    # Only 'dec*' ... 'weight' entries are regularized (matching get_weight).
    named_params = [
        ("enc_conv1.weight", jax.random.normal(k[0], (8, 4, 3, 3), jnp.float32)),
        ("enc_conv1.bias",   jax.random.normal(k[1], (8,), jnp.float32)),
        ("dec_conv1.weight", jax.random.normal(k[2], (8, 4, 3, 3), jnp.float32)),
        ("dec_conv1.bias",   jax.random.normal(k[3], (8,), jnp.float32)),
        ("dec_conv2.weight", jax.random.normal(k[4], (4, 8, 3, 3), jnp.float32)),
        ("dec_dense.weight", jax.random.normal(k[5], (16, 32), jnp.float32)),
        # Lane-aligned dense decoder weight -> exercises the in-place (zero-copy) path.
        ("dec_out.weight",   jax.random.normal(k[6], (256, 256), jnp.float32)),
    ]

    weight_decay = 1e-3

    # L2 (p=2)
    loss2 = regularization_forward(named_params, weight_decay, p=2)
    jax.block_until_ready(loss2)
    ref2 = jnp.float32(weight_decay) * sum(
        jnp.linalg.norm(w.reshape(-1)) for n, w in named_params
        if 'dec' in n and 'weight' in n)
    assert jnp.allclose(loss2, ref2, rtol=2e-5, atol=1e-6), (loss2, ref2)

    # L1 (p=1)
    loss1 = regularization_forward(named_params, weight_decay, p=1)
    jax.block_until_ready(loss1)
    ref1 = jnp.float32(weight_decay) * sum(
        jnp.sum(jnp.abs(w)) for n, w in named_params
        if 'dec' in n and 'weight' in n)
    assert jnp.allclose(loss1, ref1, rtol=2e-5, atol=1e-5), (loss1, ref1)

    print("KERNEL_OK")
</pallas_src>

<mosaic_0001>
module attributes {stable_mosaic.version = 11 : i64} {
  func.func @_norm_sweep_kernel(%arg0: i32, %arg1: i32, %arg2: memref<2xi32, #tpu.memory_space<smem>>, %arg3: memref<2xi32, #tpu.memory_space<smem>>, %arg4: memref<2xi32, #tpu.memory_space<smem>>, %arg5: memref<2xi32, #tpu.memory_space<smem>>, %arg6: memref<256x256xf32, #tpu.memory_space<vmem>>, %arg7: memref<1x1x1xf32, #tpu.memory_space<vmem>>, %arg8: memref<8x256xf32, #tpu.memory_space<vmem>>) attributes {dimension_semantics = [#tpu.dimension_semantics<parallel>, #tpu.dimension_semantics<arbitrary>], iteration_bounds = array<i64: 2, 1>, scalar_prefetch = 4 : i64, scratch_operands = 1 : i64, tpu.core_type = #tpu.core_type<tc>, window_params = [{transform_indices = @transform_0, window_bounds = array<i64: 256, 256>}, {transform_indices = @transform_1, window_bounds = array<i64: 1, 1, 1>}]} {
    %c1_i32 = arith.constant 1 : i32
    %0 = arith.muli %arg0, %c1_i32 : i32
    %1 = arith.addi %0, %arg1 : i32
    %c0_i32 = arith.constant 0 : i32
    %2 = arith.cmpi eq, %arg1, %c0_i32 : i32
    %3 = arith.extui %2 : i1 to i32
    %c0_i32_0 = arith.constant 0 : i32
    %4 = arith.cmpi ne, %3, %c0_i32_0 : i32
    scf.if %4 {
      %cst_21 = arith.constant 0.000000e+00 : f32
      %51 = vector.broadcast %cst_21 : f32 to vector<1x1x1xf32>
      %c0_22 = arith.constant 0 : index
      %c0_23 = arith.constant 0 : index
      %c0_24 = arith.constant 0 : index
      %52 = vector.load %arg7[%c0_22, %c0_23, %c0_24] : memref<1x1x1xf32, #tpu.memory_space<vmem>>, vector<1x1x1xf32>
      tpu.vector_store %arg7[%c0_22, %c0_23, %c0_24], %51 {strides = array<i32>} : memref<1x1x1xf32, #tpu.memory_space<vmem>>, vector<1x1x1xf32>,
    } else {
    }
    %5 = arith.index_cast %1 : i32 to index
    %6 = memref.load %arg4[%5] : memref<2xi32, #tpu.memory_space<smem>>
    %c1_i32_1 = arith.constant 1 : i32
    %7 = arith.cmpi eq, %6, %c1_i32_1 : i32
    %8 = arith.extui %7 : i1 to i32
    %c0_i32_2 = arith.constant 0 : i32
    %9 = arith.cmpi ne, %8, %c0_i32_2 : i32
    scf.if %9 {
      %cst_21 = arith.constant 0.000000e+00 : f32
      %51 = vector.broadcast %cst_21 : f32 to vector<8x256xf32>
      %c0_22 = arith.constant 0 : index
      %c0_23 = arith.constant 0 : index
      %52 = vector.load %arg8[%c0_22, %c0_23] : memref<8x256xf32, #tpu.memory_space<vmem>>, vector<8x256xf32>
      tpu.vector_store %arg8[%c0_22, %c0_23], %51 {strides = array<i32>} : memref<8x256xf32, #tpu.memory_space<vmem>>, vector<8x256xf32>,
    } else {
    }
    %cst = arith.constant 0.000000e+00 : f32
    %10 = vector.broadcast %cst : f32 to vector<8x256xf32>
    %c0 = arith.constant 0 : index
    %c0_3 = arith.constant 0 : index
    %11 = vector.load %arg8[%c0, %c0_3] : memref<8x256xf32, #tpu.memory_space<vmem>>, vector<8x256xf32>
    %c0_i32_4 = arith.constant 0 : i32
    %c64_i32 = arith.constant 64 : i32
    %12 = arith.muli %c0_i32_4, %c64_i32 : i32
    %13 = tpu.assume_multiple %12, 64 : i32
    %14 = arith.index_cast %13 : i32 to index
    %c0_5 = arith.constant 0 : index
    %15 = vector.load %arg6[%14, %c0_5] : memref<256x256xf32, #tpu.memory_space<vmem>>, vector<64x256xf32>
    %16 = arith.mulf %15, %15 : vector<64x256xf32>
    %17 = vector.shape_cast %16 : vector<64x256xf32> to vector<8x8x256xf32>
    %cst_6 = arith.constant dense<0.000000e+00> : vector<8x256xf32>
    %18 = vector.multi_reduction <add>, %17, %cst_6 [0] : vector<8x8x256xf32> to vector<8x256xf32>
    %19 = arith.addf %10, %18 : vector<8x256xf32>
    %c1_i32_7 = arith.constant 1 : i32
    %c64_i32_8 = arith.constant 64 : i32
    %20 = arith.muli %c1_i32_7, %c64_i32_8 : i32
    %21 = tpu.assume_multiple %20, 64 : i32
    %22 = arith.index_cast %21 : i32 to index
    %c0_9 = arith.constant 0 : index
    %23 = vector.load %arg6[%22, %c0_9] : memref<256x256xf32, #tpu.memory_space<vmem>>, vector<64x256xf32>
    %24 = arith.mulf %23, %23 : vector<64x256xf32>
    %25 = vector.shape_cast %24 : vector<64x256xf32> to vector<8x8x256xf32>
    %cst_10 = arith.constant dense<0.000000e+00> : vector<8x256xf32>
    %26 = vector.multi_reduction <add>, %25, %cst_10 [0] : vector<8x8x256xf32> to vector<8x256xf32>
    %27 = arith.addf %19, %26 : vector<8x256xf32>
    %c2_i32 = arith.constant 2 : i32
    %c64_i32_11 = arith.constant 64 : i32
    %28 = arith.muli %c2_i32, %c64_i32_11 : i32
    %29 = tpu.assume_multiple %28, 64 : i32
    %30 = arith.index_cast %29 : i32 to index
    %c0_12 = arith.constant 0 : index
    %31 = vector.load %arg6[%30, %c0_12] : memref<256x256xf32, #tpu.memory_space<vmem>>, vector<64x256xf32>
    %32 = arith.mulf %31, %31 : vector<64x256xf32>
    %33 = vector.shape_cast %32 : vector<64x256xf32> to vector<8x8x256xf32>
    %cst_13 = arith.constant dense<0.000000e+00> : vector<8x256xf32>
    %34 = vector.multi_reduction <add>, %33, %cst_13 [0] : vector<8x8x256xf32> to vector<8x256xf32>
    %35 = arith.addf %27, %34 : vector<8x256xf32>
    %c3_i32 = arith.constant 3 : i32
    %c64_i32_14 = arith.constant 64 : i32
    %36 = arith.muli %c3_i32, %c64_i32_14 : i32
    %37 = tpu.assume_multiple %36, 64 : i32
    %38 = arith.index_cast %37 : i32 to index
    %c0_15 = arith.constant 0 : index
    %39 = vector.load %arg6[%38, %c0_15] : memref<256x256xf32, #tpu.memory_space<vmem>>, vector<64x256xf32>
    %40 = arith.mulf %39, %39 : vector<64x256xf32>
    %41 = vector.shape_cast %40 : vector<64x256xf32> to vector<8x8x256xf32>
    %cst_16 = arith.constant dense<0.000000e+00> : vector<8x256xf32>
    %42 = vector.multi_reduction <add>, %41, %cst_16 [0] : vector<8x8x256xf32> to vector<8x256xf32>
    %43 = arith.addf %35, %42 : vector<8x256xf32>
    %c4_i32 = arith.constant 4 : i32
    %44 = arith.addf %11, %43 : vector<8x256xf32>
    %c0_17 = arith.constant 0 : index
    %c0_18 = arith.constant 0 : index
    %45 = vector.load %arg8[%c0_17, %c0_18] : memref<8x256xf32, #tpu.memory_space<vmem>>, vector<8x256xf32>
    tpu.vector_store %arg8[%c0_17, %c0_18], %44 {strides = array<i32>} : memref<8x256xf32, #tpu.memory_space<vmem>>, vector<8x256xf32>,
    %46 = arith.index_cast %1 : i32 to index
    %47 = memref.load %arg5[%46] : memref<2xi32, #tpu.memory_space<smem>>
    %c1_i32_19 = arith.constant 1 : i32
    %48 = arith.cmpi eq, %47, %c1_i32_19 : i32
    %49 = arith.extui %48 : i1 to i32
    %c0_i32_20 = arith.constant 0 : i32
    %50 = arith.cmpi ne, %49, %c0_i32_20 : i32
    scf.if %50 {
      %c0_21 = arith.constant 0 : index
      %c0_22 = arith.constant 0 : index
      %51 = vector.load %arg8[%c0_21, %c0_22] : memref<8x256xf32, #tpu.memory_space<vmem>>, vector<8x256xf32>
      %52 = vector.shape_cast %51 : vector<8x256xf32> to vector<1x8x256xf32>
      %cst_23 = arith.constant dense<0.000000e+00> : vector<1xf32>
      %53 = vector.multi_reduction <add>, %52, %cst_23 [1, 2] : vector<1x8x256xf32> to vector<1xf32>
      %54 = vector.shape_cast %53 : vector<1xf32> to vector<1x1x1xf32>
      %55 = vector.extract %54[0, 0, 0] : f32 from vector<1x1x1xf32>
      %56 = tpu.iota {dimensions = array<i32: 2>} : vector<1x1x1xi32>
      %57 = arith.index_cast %1 : i32 to index
      %58 = memref.load %arg3[%57] : memref<2xi32, #tpu.memory_space<smem>>
      %59 = vector.broadcast %58 : i32 to vector<1x1x1xi32>
      %60 = arith.cmpi eq, %56, %59 : vector<1x1x1xi32>
      %c0_24 = arith.constant 0 : index
      %c0_25 = arith.constant 0 : index
      %c0_26 = arith.constant 0 : index
      %61 = vector.load %arg7[%c0_24, %c0_25, %c0_26] : memref<1x1x1xf32, #tpu.memory_space<vmem>>, vector<1x1x1xf32>
      %62 = vector.broadcast %55 : f32 to vector<1x1x1xf32>
      %63 = arith.select %60, %62, %61 : vector<1x1x1xi1>, vector<1x1x1xf32>
      %c0_27 = arith.constant 0 : index
      %c0_28 = arith.constant 0 : index
      %c0_29 = arith.constant 0 : index
      %64 = vector.load %arg7[%c0_27, %c0_28, %c0_29] : memref<1x1x1xf32, #tpu.memory_space<vmem>>, vector<1x1x1xf32>
      tpu.vector_store %arg7[%c0_27, %c0_28, %c0_29], %63 {strides = array<i32>} : memref<1x1x1xf32, #tpu.memory_space<vmem>>, vector<1x1x1xf32>,
    } else {
    }
    return
  }
  func.func @transform_0(%arg0: i32, %arg1: i32, %arg2: memref<2xi32, #tpu.memory_space<smem>>, %arg3: memref<2xi32, #tpu.memory_space<smem>>, %arg4: memref<2xi32, #tpu.memory_space<smem>>, %arg5: memref<2xi32, #tpu.memory_space<smem>>) -> (i32, i32) {
    %c1_i32 = arith.constant 1 : i32
    %0 = arith.muli %arg0, %c1_i32 : i32
    %1 = arith.addi %0, %arg1 : i32
    %2 = arith.index_cast %1 : i32 to index
    %3 = memref.load %arg2[%2] : memref<2xi32, #tpu.memory_space<smem>>
    %c0_i32 = arith.constant 0 : i32
    %c0_i32_0 = arith.constant 0 : i32
    return %3, %c0_i32 : i32, i32
  }
  func.func @transform_1(%arg0: i32, %arg1: i32, %arg2: memref<2xi32, #tpu.memory_space<smem>>, %arg3: memref<2xi32, #tpu.memory_space<smem>>, %arg4: memref<2xi32, #tpu.memory_space<smem>>, %arg5: memref<2xi32, #tpu.memory_space<smem>>) -> (i32, i32, i32) {
    %c0_i32 = arith.constant 0 : i32
    %c0_i32_0 = arith.constant 0 : i32
    %c0_i32_1 = arith.constant 0 : i32
    return %arg0, %c0_i32, %c0_i32_0 : i32, i32, i32
  }
}

module attributes {stable_mosaic.version = 11 : i64} {
  func.func @_norm_sweep_kernel(%arg0: i32, %arg1: i32, %arg2: memref<4xi32, #tpu.memory_space<smem>>, %arg3: memref<4xi32, #tpu.memory_space<smem>>, %arg4: memref<4xi32, #tpu.memory_space<smem>>, %arg5: memref<4xi32, #tpu.memory_space<smem>>, %arg6: memref<8x128xf32, #tpu.memory_space<vmem>>, %arg7: memref<1x1x3xf32, #tpu.memory_space<vmem>>, %arg8: memref<8x128xf32, #tpu.memory_space<vmem>>) attributes {dimension_semantics = [#tpu.dimension_semantics<parallel>, #tpu.dimension_semantics<arbitrary>], iteration_bounds = array<i64: 2, 2>, scalar_prefetch = 4 : i64, scratch_operands = 1 : i64, tpu.core_type = #tpu.core_type<tc>, window_params = [{transform_indices = @transform_0, window_bounds = array<i64: 8, 128>}, {transform_indices = @transform_1, window_bounds = array<i64: 1, 1, 3>}]} {
    %c2_i32 = arith.constant 2 : i32
    %0 = arith.muli %arg0, %c2_i32 : i32
    %1 = arith.addi %0, %arg1 : i32
    %c0_i32 = arith.constant 0 : i32
    %2 = arith.cmpi eq, %arg1, %c0_i32 : i32
    %3 = arith.extui %2 : i1 to i32
    %c0_i32_0 = arith.constant 0 : i32
    %4 = arith.cmpi ne, %3, %c0_i32_0 : i32
    scf.if %4 {
      %cst_11 = arith.constant 0.000000e+00 : f32
      %27 = vector.broadcast %cst_11 : f32 to vector<1x1x3xf32>
      %c0_12 = arith.constant 0 : index
      %c0_13 = arith.constant 0 : index
      %c0_14 = arith.constant 0 : index
      %28 = vector.load %arg7[%c0_12, %c0_13, %c0_14] : memref<1x1x3xf32, #tpu.memory_space<vmem>>, vector<1x1x3xf32>
      tpu.vector_store %arg7[%c0_12, %c0_13, %c0_14], %27 {strides = array<i32>} : memref<1x1x3xf32, #tpu.memory_space<vmem>>, vector<1x1x3xf32>,
    } else {
    }
    %5 = arith.index_cast %1 : i32 to index
    %6 = memref.load %arg4[%5] : memref<4xi32, #tpu.memory_space<smem>>
    %c1_i32 = arith.constant 1 : i32
    %7 = arith.cmpi eq, %6, %c1_i32 : i32
    %8 = arith.extui %7 : i1 to i32
    %c0_i32_1 = arith.constant 0 : i32
    %9 = arith.cmpi ne, %8, %c0_i32_1 : i32
    scf.if %9 {
      %cst_11 = arith.constant 0.000000e+00 : f32
      %27 = vector.broadcast %cst_11 : f32 to vector<8x128xf32>
      %c0_12 = arith.constant 0 : index
      %c0_13 = arith.constant 0 : index
      %28 = vector.load %arg8[%c0_12, %c0_13] : memref<8x128xf32, #tpu.memory_space<vmem>>, vector<8x128xf32>
      tpu.vector_store %arg8[%c0_12, %c0_13], %27 {strides = array<i32>} : memref<8x128xf32, #tpu.memory_space<vmem>>, vector<8x128xf32>,
    } else {
    }
    %cst = arith.constant 0.000000e+00 : f32
    %10 = vector.broadcast %cst : f32 to vector<8x128xf32>
    %c0 = arith.constant 0 : index
    %c0_2 = arith.constant 0 : index
    %11 = vector.load %arg8[%c0, %c0_2] : memref<8x128xf32, #tpu.memory_space<vmem>>, vector<8x128xf32>
    %c0_i32_3 = arith.constant 0 : i32
    %c8_i32 = arith.constant 8 : i32
    %12 = arith.muli %c0_i32_3, %c8_i32 : i32
    %13 = tpu.assume_multiple %12, 8 : i32
    %14 = arith.index_cast %13 : i32 to index
    %c0_4 = arith.constant 0 : index
    %15 = vector.load %arg6[%14, %c0_4] : memref<8x128xf32, #tpu.memory_space<vmem>>, vector<8x128xf32>
    %16 = arith.mulf %15, %15 : vector<8x128xf32>
    %17 = vector.shape_cast %16 : vector<8x128xf32> to vector<1x8x128xf32>
    %cst_5 = arith.constant dense<0.000000e+00> : vector<8x128xf32>
    %18 = vector.multi_reduction <add>, %17, %cst_5 [0] : vector<1x8x128xf32> to vector<8x128xf32>
    %19 = arith.addf %10, %18 : vector<8x128xf32>
    %c1_i32_6 = arith.constant 1 : i32
    %20 = arith.addf %11, %19 : vector<8x128xf32>
    %c0_7 = arith.constant 0 : index
    %c0_8 = arith.constant 0 : index
    %21 = vector.load %arg8[%c0_7, %c0_8] : memref<8x128xf32, #tpu.memory_space<vmem>>, vector<8x128xf32>
    tpu.vector_store %arg8[%c0_7, %c0_8], %20 {strides = array<i32>} : memref<8x128xf32, #tpu.memory_space<vmem>>, vector<8x128xf32>,
    %22 = arith.index_cast %1 : i32 to index
    %23 = memref.load %arg5[%22] : memref<4xi32, #tpu.memory_space<smem>>
    %c1_i32_9 = arith.constant 1 : i32
    %24 = arith.cmpi eq, %23, %c1_i32_9 : i32
    %25 = arith.extui %24 : i1 to i32
    %c0_i32_10 = arith.constant 0 : i32
    %26 = arith.cmpi ne, %25, %c0_i32_10 : i32
    scf.if %26 {
      %c0_11 = arith.constant 0 : index
      %c0_12 = arith.constant 0 : index
      %27 = vector.load %arg8[%c0_11, %c0_12] : memref<8x128xf32, #tpu.memory_space<vmem>>, vector<8x128xf32>
      %28 = vector.shape_cast %27 : vector<8x128xf32> to vector<1x8x128xf32>
      %cst_13 = arith.constant dense<0.000000e+00> : vector<1xf32>
      %29 = vector.multi_reduction <add>, %28, %cst_13 [1, 2] : vector<1x8x128xf32> to vector<1xf32>
      %30 = vector.shape_cast %29 : vector<1xf32> to vector<1x1x1xf32>
      %31 = vector.extract %30[0, 0, 0] : f32 from vector<1x1x1xf32>
      %32 = tpu.iota {dimensions = array<i32: 2>} : vector<1x1x3xi32>
      %33 = arith.index_cast %1 : i32 to index
      %34 = memref.load %arg3[%33] : memref<4xi32, #tpu.memory_space<smem>>
      %35 = vector.broadcast %34 : i32 to vector<1x1x3xi32>
      %36 = arith.cmpi eq, %32, %35 : vector<1x1x3xi32>
      %c0_14 = arith.constant 0 : index
      %c0_15 = arith.constant 0 : index
      %c0_16 = arith.constant 0 : index
      %37 = vector.load %arg7[%c0_14, %c0_15, %c0_16] : memref<1x1x3xf32, #tpu.memory_space<vmem>>, vector<1x1x3xf32>
      %38 = vector.broadcast %31 : f32 to vector<1x1x3xf32>
      %39 = arith.select %36, %38, %37 : vector<1x1x3xi1>, vector<1x1x3xf32>
      %c0_17 = arith.constant 0 : index
      %c0_18 = arith.constant 0 : index
      %c0_19 = arith.constant 0 : index
      %40 = vector.load %arg7[%c0_17, %c0_18, %c0_19] : memref<1x1x3xf32, #tpu.memory_space<vmem>>, vector<1x1x3xf32>
      tpu.vector_store %arg7[%c0_17, %c0_18, %c0_19], %39 {strides = array<i32>} : memref<1x1x3xf32, #tpu.memory_space<vmem>>, vector<1x1x3xf32>,
    } else {
    }
    return
  }
  func.func @transform_0(%arg0: i32, %arg1: i32, %arg2: memref<4xi32, #tpu.memory_space<smem>>, %arg3: memref<4xi32, #tpu.memory_space<smem>>, %arg4: memref<4xi32, #tpu.memory_space<smem>>, %arg5: memref<4xi32, #tpu.memory_space<smem>>) -> (i32, i32) {
    %c2_i32 = arith.constant 2 : i32
    %0 = arith.muli %arg0, %c2_i32 : i32
    %1 = arith.addi %0, %arg1 : i32
    %2 = arith.index_cast %1 : i32 to index
    %3 = memref.load %arg2[%2] : memref<4xi32, #tpu.memory_space<smem>>
    %c0_i32 = arith.constant 0 : i32
    %c0_i32_0 = arith.constant 0 : i32
    return %3, %c0_i32 : i32, i32
  }
  func.func @transform_1(%arg0: i32, %arg1: i32, %arg2: memref<4xi32, #tpu.memory_space<smem>>, %arg3: memref<4xi32, #tpu.memory_space<smem>>, %arg4: memref<4xi32, #tpu.memory_space<smem>>, %arg5: memref<4xi32, #tpu.memory_space<smem>>) -> (i32, i32, i32) {
    %c0_i32 = arith.constant 0 : i32
    %c0_i32_0 = arith.constant 0 : i32
    %c0_i32_1 = arith.constant 0 : i32
    return %arg0, %c0_i32, %c0_i32_0 : i32, i32, i32
  }
}

</mosaic_0001>

<bundles_post_ra>
// kernel: _regularization_loss.2
= control target key start
LH: loop header
LB: loop body
LE: loop exit
PB: predicated region body
PF: predicated region fallthrough
CT: control target
= control target key end

     0   :  { %s1017_s0 = inlined_call_operand.vmem [shape: s32[2], index: 0, kind: input, shape index: {}, may-alias: {0,1}]   ;;  %s1018_s4 = inlined_call_operand.hbm [shape: f32[256,256], index: 4, kind: input, shape index: {}]   ;;  %s1019_s5 = inlined_call_operand.vmem [shape: f32[2,1,1], index: 5, kind: output, shape index: {}]   ;;  %s1020_s1 = inlined_call_operand.vmem [shape: s32[2], index: 1, kind: input, shape index: {}, may-alias: {0,1}]   ;;  %s1021_s2 = inlined_call_operand.vmem [shape: s32[2], index: 2, kind: input, shape index: {}]   ;;  %s1022_s3 = inlined_call_operand.vmem [shape: s32[2], index: 3, kind: input, shape index: {}]  }
   0x1   :  { %s10_s20 = sshll.u32 %s1017_s0, 4  ;;  %s14_s23 = sshll.u32 %s1020_s1, 4  ;;  %s11_s20 = int_to_ptr.vmem [resolvable:$true] %s10_s20  ;;  %s15_s23 = int_to_ptr.vmem [resolvable:$true] %s14_s23 }
   0x2   :  { %s631_s24 = scalar_lea.vmem %s11_s20, 16  ;;  %p636_p1 = scmp.lt.s32.totalorder %s11_s20, %s11_s20 }
   0x3   :  { %p632_p0 = scmp.ne.s32.totalorder %s11_s20, %s631_s24  ;;  %p637_p2 = scmp.lt.s32.totalorder %s631_s24, %s631_s24 }
   0x5   :  { %p638_p3 = por %p637_p2, %p636_p1 }
   0x7   :  { %p639_p4 = pnand %p638_p3, %p632_p0 }
   0x9   :  { %642 = shalt.err (!%p639_p4)  }
   0xa   :  { %s763_s25 = smov [#allocation4]   ;;  %s643_s26 = scalar_lea.vmem %s15_s23, 16 }
   0xb   :  { %13 = dma.vmem_to_smem %s11_s20, 16, %s763_s25, [#allocation3] }
   0xc   :  { %p644_p5 = scmp.ne.s32.totalorder %s15_s23, %s643_s26  ;;  %p648_p6 = scmp.lt.s32.totalorder %s15_s23, %s15_s23 }
   0xd   :  { %p649_p7 = scmp.lt.s32.totalorder %s643_s26, %s643_s26 }
   0xf   :  { %p650_p8 = por %p649_p7, %p648_p6 }
  0x11   :  { %p651_p9 = pnand %p650_p8, %p644_p5 }
  0x13   :  { %654 = shalt.err (!%p651_p9)  }
  0x14   :  { %s764_s0 = smov [#allocation5]   ;;  %s18_s28 = sshll.u32 %s1021_s2, 4  ;;  %s19_s28 = int_to_ptr.vmem [resolvable:$true] %s18_s28 }
  0x15   :  { %17 = dma.vmem_to_smem %s15_s23, 16, %s764_s0, [#allocation3] }
  0x16   :  { %s22_s6 = sshll.u32 %s1022_s3, 4  ;;  %s655_s7 = scalar_lea.vmem %s19_s28, 16  ;;  %s23_s6 = int_to_ptr.vmem [resolvable:$true] %s22_s6 }
  0x17   :  { %p656_p10 = scmp.ne.s32.totalorder %s19_s28, %s655_s7  ;;  %p660_p11 = scmp.lt.s32.totalorder %s19_s28, %s19_s28 }
  0x18   :  { %p661_p12 = scmp.lt.s32.totalorder %s655_s7, %s655_s7 }
  0x1a   :  { %p662_p13 = por %p661_p12, %p660_p11 }
  0x1c   :  { %p663_p0 = pnand %p662_p13, %p656_p10 }
  0x1e   :  { %666 = shalt.err (!%p663_p0)  }
  0x1f   :  { %s765_s8 = smov [#allocation6]   ;;  %s667_s9 = scalar_lea.vmem %s23_s6, 16 }
  0x20   :  { %21 = dma.vmem_to_smem %s19_s28, 16, %s765_s8, [#allocation3] }
  0x21   :  { %p668_p1 = scmp.ne.s32.totalorder %s23_s6, %s667_s9  ;;  %p672_p2 = scmp.lt.s32.totalorder %s23_s6, %s23_s6 }
  0x22   :  { %p673_p3 = scmp.lt.s32.totalorder %s667_s9, %s667_s9 }
  0x24   :  { %p674_p4 = por %p673_p3, %p672_p2 }
  0x26   :  { %p675_p5 = pnand %p674_p4, %p668_p1 }
  0x28   :  { %678 = shalt.err (!%p675_p5)  }
  0x29   :  { %s766_s2 = smov [#allocation7]  }
  0x2a   :  { %25 = dma.vmem_to_smem %s23_s6, 16, %s766_s2, [#allocation3] }
  0x2b   :  { %733 = dma.done.wait [#allocation3], 64 }
  0x2c   :  { %734 = vsyncadd [#allocation3], 4294967232 }
  0x2d   :  { %27 = sfence }
  0x2e   :  { %28 = vsyncpa [#allocation9], 0 }
  0x2f   :  { %30 = vsyncpa [#allocation9 + $0x1], 0  ;;  %s814_s3 = smov 0   ;;  %s816_s10 = smov 0  }
  0x30   :  { %s818_s11 = smov 0   ;;  %s820_s12 = smov 0  }
  0x31   :  { %s822_s13 = smov 0   ;;  %s824_s14 = smov 0  }
  0x32 LB: > { %s48_s15 = sadd.s32 1, %s757_s13  ;;  %s498_s16 = sadd.s32 4294967295, %s761_s14   ;;  %s761_s14 = sphi %s824_s14, %s36_s14   ;;  %s757_s13 = sphi %s822_s13, %s1032_s13   ;;  %s753_s12 = sphi %s820_s12, %s1031_s12   ;;  %s749_s11 = sphi %s818_s11, %s1030_s11   ;;  %s745_s10 = sphi %s816_s10, %s1029_s10   ;;  %s741_s3 = sphi %s814_s3, %s1028_s3  }
  0x33   : > { %p50_p6 = scmp.ge.s32.totalorder %s48_s15, 2  ;;  %s53_s17 = sld [smem:[#allocation4 + %s757_s13]] }
  0x34   : > { %p66_p7 = scmp.ne.s32.totalorder %s749_s11, %s745_s10  ;;  %p67_p8 = scmp.eq.s32.totalorder %s761_s14, 0 }
  0x35   : > { %s1034_s15 = smov (%p50_p6, %s48_s15), 0  ;;  %p72_p9 = scmp.ne.s32.totalorder %s745_s10, %s741_s3 }
  0x36   : > { %s55_s18 = sld [smem:[#allocation4 + %s1034_s15]]  ;;  %p73_p10 = scmp.eq.s32.totalorder %s498_s16, 0 }
  0x37   : > { %s122_s20 = sand.u32 1, %s749_s11   ;;  %p68_p12 = por %p67_p8, %p66_p7 }
  0x38   : > { %p852_p11 = por %p73_p10, %p72_p9  ;;  %s59_s21 = sadd.s32 1, %s749_s11 }
  0x39   : > { %p574_p13 = scmp.lt.s32.totalorder %s761_s14, 2  ;;  %s502_s23 = sshll.u32 %s122_s20, 9 }
  0x3a   : > { %s1024_s19 = scalar_select %p852_p11, 1, 0 }
  0x3b   : > { %p859_p1 = pnand %p574_p13, %p68_p12  ;;  %p506_p2 = scmp.ge.s32.totalorder %s761_s14, 1 }
  0x3c   : > { %s56_s22 = ssub.s32 %s53_s17, %s55_s18  ;;  %p144_p3 = scmp.lt.s32.totalorder %s761_s14, 3 }
  0x3d   : > { %p57_p0 = scmp.eq.s32.totalorder %s56_s22, 0  ;;  %s126_s27 = scalar_lea.vmem [#allocation8], %s502_s23 }
  0x3e   : > { %s564_s25 = scalar_select %p68_p12, [#allocation4], [#allocation10] }
  0x3f   : > { %s864_s26 = scalar_select %p57_p0, %s749_s11, %s59_s21  }
  0x40   : > { %s565_s0 = scalar_select %p68_p12, %s757_s13, 0 }
  0x41   : > { %s1036_s25 = smov (!%p574_p13, %s564_s25), [#allocation11]  ;;  %s136_s28 = sshll.u32 %s126_s27, 4  ;;  %s873_s28 = int_to_ptr.vmem [resolvable:$true] %s136_s28 }
  0x42   : > { %s1038_s0 = smov (!%p574_p13, %s565_s0), 0  ;;  %p869_p4 = pnand %p506_p2, %p144_p3 }
  0x43   : > { %s128_s1 = sld [smem:[%s1036_s25 + %s1038_s0]]  ;;  %s880_s9 = scalar_lea.sflag [#allocation9], %s122_s20 }
  0x44   : > { %p681_p6 = pneg %p859_p1  ;;  %s684_s17 = scalar_lea.hbm %s1018_s4, 8192 }
  0x49   : > { %s561_s30 = sshll.u32 %s128_s1, 13 }
  0x4a   : > { %s878_s8 = scalar_lea.hbm %s1018_s4, %s561_s30 }
  0x4b   : > { %s679_s2 = scalar_lea.hbm %s878_s8, 8192  ;;  %p685_p9 = scmp.lt.u32.totalorder %s878_s8, %s1018_s4 }
  0x4c   : > { %p680_p5 = scmp.ne.s32.totalorder %s878_s8, %s679_s2  ;;  %p686_p10 = scmp.lt.u32.totalorder %s684_s17, %s679_s2 }
  0x4d   : > { %p688_p13 = scmp.lt.u32.totalorder %s679_s2, %s878_s8 }
  0x4e   : > { %p682_p7 = pnand %p681_p6, %p680_p5  ;;  %p687_p12 = por %p686_p10, %p685_p9 }
  0x50   : > { %p683_p8 = pneg %p682_p7  ;;  %p689_p0 = por %p688_p13, %p687_p12 }
  0x52   : > { %p690_p2 = pnand %p689_p0, %p683_p8 }
  0x54   : > { %693 = shalt.err (!%p690_p2)
}
  0x55   : > { %s694_s20 = scalar_lea.vmem %s873_s28, 8192  ;;  %s767_s22 = smov [#allocation8]  }
  0x56   : > { %p695_p3 = scmp.ne.s32.totalorder %s873_s28, %s694_s20  ;;  %s699_s23 = sshll.u32 %s767_s22, 4  ;;  %s700_s23 = int_to_ptr.vmem [resolvable:$false] %s699_s23 }
  0x57   : > { %s701_s25 = scalar_lea.vmem %s700_s23, 16384  ;;  %p702_p11 = scmp.lt.s32.totalorder %s873_s28, %s700_s23 }
  0x58   : > { %p697_p5 = pnand %p695_p3, %p681_p6  ;;  %p703_p9 = scmp.lt.s32.totalorder %s701_s25, %s694_s20 }
  0x5a   : > { %p698_p7 = pneg %p697_p5  ;;  %p704_p10 = por %p703_p9, %p702_p11 }
  0x5c   : > { %p705_p12 = pnand %p704_p10, %p698_p7 }
  0x5e   : > { %708 = shalt.err (!%p705_p12)
}
  0x5f   : > { %s768_s0 = smov 256   ;;  %s769_s1 = smov 16  }
  0x60   : > { %573 = dma.hbm_to_vmem [thread:$0]  (!%p859_p1), %s878_s8, 8192, %s873_s28, %s880_s9, %s768_s0, %s768_s0, %s769_s1  }
  0x61   : > { %148 = sbr.rel (%p869_p4) target bundleno = 379 (0x17b), region = 24  ;;  %s150_s27 = sand.u32 (!%p869_p4), 1, %s745_s10  }
  0x62   : > { %s507_s30 = sshll.u32 (!%p869_p4), %s150_s27, 9  ;;  %s151_s6 = scalar_lea.sflag (!%p869_p4), [#allocation9], %s150_s27 }
  0x63   : > { %s911_s7 = scalar_lea.vmem (!%p869_p4), [#allocation8], %s507_s30  ;;  %p1027_p11 = scmp.ne.s32.totalorder (!%p869_p4), %s1024_s19, 0 }
  0x68   : > { %736 = dma.done.wait (%p1027_p11), %s151_s6, 8192  }
  0x69   : > { %738 = vsyncadd (%p1027_p11), %s151_s6, 4294959104  ;;  %p174_p6 = scmp.lt.s32.totalorder %s753_s12, 1  ;;  %s184_s24 = sld [smem:[#allocation6 + %s753_s12]]  ;;  %vm182_vm0 = vcmask 0   ;;  %v770_v0 = vmov 0.0  }
  0x6b   : > { %s175_s28 = scalar_select %p174_p6, %s753_s12, 1 }
  0x6d   : > { %s923_s9 = scalar_lea.vmem %s1019_s5, %s175_s28 }
  0x6e   : > { %183 = vst.msk [vmem:[%s923_s9] sm:$0x1] %vm182_vm0, %v770_v0 }
  0x6f   : > { %p508_p1 = scmp.ne.s32.totalorder %s184_s24, 1 }
  0x70   : > { %v771_v1 = vmov (!%p508_p1), 0.0  }
  0x71   : > { %188 = sbr.rel (%p508_p1) target bundleno = 120 (0x78), region = 36  ;;  %189 = vst [vmem:[#allocation2] sm:$0xff] (!%p508_p1), %v771_v1  ;;  %190 = vst [vmem:[#allocation2 + $0x8] sm:$0xff] (!%p508_p1), %v771_v1 }
  0x78 PF: > { %v196_v2 = vld [vmem:[%s911_s7] sm:$0xff]  ;;  %s929_s19 = sld [smem:[#allocation7 + %s753_s12]]  ;;  %v197_v3 = vld [vmem:[%s911_s7 + $0x8] sm:$0xff]  ;;  %v198_v4 = vld [vmem:[%s911_s7 + $0x10] sm:$0xff] }
  0x79   : > { %v199_v5 = vld [vmem:[%s911_s7 + $0x18] sm:$0xff]  ;;  %v212_v6 = vmul.f32 %v196_v2, %v196_v2  ;;  %v200_v7 = vld [vmem:[%s911_s7 + $0x20] sm:$0xff]  ;;  %v201_v8 = vld [vmem:[%s911_s7 + $0x28] sm:$0xff]  ;;  %v213_v10 = vmul.f32 %v197_v3, %v197_v3  ;;  %v214_v11 = vmul.f32 %v198_v4, %v198_v4 }
  0x7a   : > { %v202_v9 = vld [vmem:[%s911_s7 + $0x30] sm:$0xff]  ;;  %v215_v12 = vmul.f32 %v199_v5, %v199_v5  ;;  %v203_v13 = vld [vmem:[%s911_s7 + $0x38] sm:$0xff]  ;;  %v204_v14 = vld [vmem:[%s911_s7 + $0x40] sm:$0xff]  ;;  %v216_v15 = vmul.f32 %v200_v7, %v200_v7  ;;  %v217_v16 = vmul.f32 %v201_v8, %v201_v8 }
  0x7b   : > { %v205_v17 = vld [vmem:[%s911_s7 + $0x48] sm:$0xff]  ;;  %v218_v18 = vmul.f32 %v202_v9, %v202_v9  ;;  %v228_v19 = vadd.f32 %v214_v11, %v212_v6  ;;  %v206_v20 = vld [vmem:[%s911_s7 + $0x50] sm:$0xff]  ;;  %v207_v21 = vld [vmem:[%s911_s7 + $0x58] sm:$0xff]  ;;  %v219_v22 = vmul.f32 %v203_v13, %v203_v13  ;;  %v220_v24 = vmul.f32 %v204_v14, %v204_v14 }
  0x7c   : > { %v235_v23 = vadd.f32 %v215_v12, %v213_v10  ;;  %v509_v26 = vld [vmem:[%s911_s7 + $0x80] sm:$0xff]  ;;  %v510_v27 = vld [vmem:[%s911_s7 + $0x88] sm:$0xff]  ;;  %v511_v28 = vld [vmem:[%s911_s7 + $0x90] sm:$0xff]  ;;  %v221_v29 = vmul.f32 %v205_v17, %v205_v17  ;;  %v222_v39 = vmul.f32 %v206_v20, %v206_v20  ;;  %v223_v45 = vmul.f32 %v207_v21, %v207_v21 }
  0x7d   : > { %v229_v25 = vadd.f32 %v228_v19, %v216_v15  ;;  %v512_v31 = vld [vmem:[%s911_s7 + $0x98] sm:$0xff]  ;;  %v513_v32 = vld [vmem:[%s911_s7 + $0xa0] sm:$0xff]  ;;  %v514_v33 = vld [vmem:[%s911_s7 + $0xa8] sm:$0xff]  ;;  %v263_v34 = vmul.f32 %v509_v26, %v509_v26  ;;  %v264_v36 = vmul.f32 %v510_v27, %v510_v27  ;;  %v265_v37 = vmul.f32 %v511_v28, %v511_v28 }
  0x7e   : > { %v236_v30 = vadd.f32 %v235_v23, %v217_v16  ;;  %v266_v38 = vmul.f32 %v512_v31, %v512_v31  ;;  %v515_v41 = vld [vmem:[%s911_s7 + $0xb0] sm:$0xff]  ;;  %v516_v42 = vld [vmem:[%s911_s7 + $0xb8] sm:$0xff]  ;;  %v208_v43 = vld [vmem:[%s911_s7 + $0x60] sm:$0xff]  ;;  %v267_v48 = vmul.f32 %v513_v32, %v513_v32  ;;  %v268_v49 = vmul.f32 %v514_v33, %v514_v33  ;;  %p557_p4 = scmp.ne.s32.totalorder %s929_s19, 1 }
  0x7f   : > { %v230_v35 = vadd.f32 %v229_v25, %v218_v18  ;;  %v209_v44 = vld [vmem:[%s911_s7 + $0x68] sm:$0xff]  ;;  %v517_v47 = vld [vmem:[%s911_s7 + $0xc0] sm:$0xff]  ;;  %v210_v50 = vld [vmem:[%s911_s7 + $0x70] sm:$0xff]  ;;  %v269_v54 = vmul.f32 %v515_v41, %v515_v41  ;;  %v270_v55 = vmul.f32 %v516_v42, %v516_v42  ;;  %v279_v56 = vadd.f32 %v265_v37, %v263_v34  ;;  %s420_s2 = sld [smem:[#allocation5 + %s753_s12]] (!%p557_p4) }
  0x80   : > { %v237_v40 = vadd.f32 %v236_v30, %v219_v22  ;;  %v518_v52 = vld [vmem:[%s911_s7 + $0xc8] sm:$0xff]  ;;  %v211_v53 = vld [vmem:[%s911_s7 + $0x78] sm:$0xff]  ;;  %v286_v57 = vadd.f32 %v266_v38, %v264_v36  ;;  %v525_v58 = vld [vmem:[%s911_s7 + $0x100] sm:$0xff]  ;;  %v224_v60 = vmul.f32 %v208_v43, %v208_v43  ;;  %v225_v61 = vmul.f32 %v209_v44, %v209_v44 }
  0x81   : > { %v231_v46 = vadd.f32 %v230_v35, %v220_v24  ;;  %v527_v59 = vld [vmem:[%s911_s7 + $0x110] sm:$0xff]  ;;  %v271_v63 = vmul.f32 %v517_v47, %v517_v47  ;;  %v526_v0 = vld [vmem:[%s911_s7 + $0x108] sm:$0xff]  ;;  %v528_v1 = vld [vmem:[%s911_s7 + $0x118] sm:$0xff]  ;;  %v272_v5 = vmul.f32 %v518_v52, %v518_v52  ;;  %v280_v6 = vadd.f32 %v279_v56, %v267_v48 }
  0x82   : > { %v238_v51 = vadd.f32 %v237_v40, %v221_v29  ;;  %v519_v3 = vld [vmem:[%s911_s7 + $0xd0] sm:$0xff]  ;;  %v520_v4 = vld [vmem:[%s911_s7 + $0xd8] sm:$0xff]  ;;  %v287_v7 = vadd.f32 %v286_v57, %v268_v49  ;;  %v529_v8 = vld [vmem:[%s911_s7 + $0x120] sm:$0xff]  ;;  %v226_v9 = vmul.f32 %v210_v50, %v210_v50  ;;  %v227_v10 = vmul.f32 %v211_v53, %v211_v53 }
  0x83   : > { %v232_v62 = vadd.f32 %v231_v46, %v222_v39  ;;  %v530_v11 = vld [vmem:[%s911_s7 + $0x128] sm:$0xff]  ;;  %v314_v12 = vmul.f32 %v525_v58, %v525_v58  ;;  %v316_v13 = vmul.f32 %v527_v59, %v527_v59  ;;  %v521_v14 = vld [vmem:[%s911_s7 + $0xe0] sm:$0xff]  ;;  %v281_v16 = vadd.f32 %v280_v6, %v269_v54  ;;  %v531_v18 = vld [vmem:[%s911_s7 + $0x130] sm:$0xff] }
  0x84   : > { %v239_v2 = vadd.f32 %v238_v51, %v223_v45  ;;  %v522_v15 = vld [vmem:[%s911_s7 + $0xe8] sm:$0xff]  ;;  %v288_v17 = vadd.f32 %v287_v7, %v270_v55  ;;  %v315_v19 = vmul.f32 %v526_v0, %v526_v0  ;;  %v317_v20 = vmul.f32 %v528_v1, %v528_v1  ;;  %v523_v22 = vld [vmem:[%s911_s7 + $0xf0] sm:$0xff]  ;;  %v524_v23 = vld [vmem:[%s911_s7 + $0xf8] sm:$0xff] }
  0x85   : > { %v233_v21 = vadd.f32 %v232_v62, %v224_v60  ;;  %v273_v24 = vmul.f32 %v519_v3, %v519_v3  ;;  %v274_v25 = vmul.f32 %v520_v4, %v520_v4  ;;  %v532_v26 = vld [vmem:[%s911_s7 + $0x138] sm:$0xff]  ;;  %v318_v27 = vmul.f32 %v529_v8, %v529_v8  ;;  %v533_v31 = vld [vmem:[%s911_s7 + $0x140] sm:$0xff]  ;;  %v534_v35 = vld [vmem:[%s911_s7 + $0x148] sm:$0xff] }
  0x86   : > { %v240_v28 = vadd.f32 %v239_v2, %v225_v61  ;;  %v282_v29 = vadd.f32 %v281_v16, %v271_v63  ;;  %v289_v30 = vadd.f32 %v288_v17, %v272_v5  ;;  %v319_v32 = vmul.f32 %v530_v11, %v530_v11  ;;  %v535_v40 = vld [vmem:[%s911_s7 + $0x150] sm:$0xff]  ;;  %v536_v41 = vld [vmem:[%s911_s7 + $0x158] sm:$0xff]  ;;  %v541_v44 = vld [vmem:[%s911_s7 + $0x180] sm:$0xff] }
  0x87   : > { %v275_v33 = vmul.f32 %v521_v14, %v521_v14  ;;  %v276_v34 = vmul.f32 %v522_v15, %v522_v15  ;;  %v320_v36 = vmul.f32 %v531_v18, %v531_v18  ;;  %v330_v37 = vadd.f32 %v316_v13, %v314_v12  ;;  %v542_v49 = vld [vmem:[%s911_s7 + $0x188] sm:$0xff]  ;;  %v543_v50 = vld [vmem:[%s911_s7 + $0x190] sm:$0xff]  ;;  %v544_v51 = vld [vmem:[%s911_s7 + $0x198] sm:$0xff] }
  0x88   : > { %v277_v38 = vmul.f32 %v523_v22, %v523_v22  ;;  %v278_v39 = vmul.f32 %v524_v23, %v524_v23  ;;  %v321_v42 = vmul.f32 %v532_v26, %v532_v26  ;;  %v337_v43 = vadd.f32 %v317_v20, %v315_v19  ;;  %v537_v54 = vld [vmem:[%s911_s7 + $0x160] sm:$0xff]  ;;  %v538_v57 = vld [vmem:[%s911_s7 + $0x168] sm:$0xff]  ;;  %v539_v0 = vld [vmem:[%s911_s7 + $0x170] sm:$0xff] }
  0x89   : > { %v283_v45 = vadd.f32 %v282_v29, %v273_v24  ;;  %v290_v46 = vadd.f32 %v289_v30, %v274_v25  ;;  %v322_v47 = vmul.f32 %v533_v31, %v533_v31  ;;  %v331_v48 = vadd.f32 %v330_v37, %v318_v27  ;;  %v545_v61 = vld [vmem:[%s911_s7 + $0x1a0] sm:$0xff]  ;;  %v546_v62 = vld [vmem:[%s911_s7 + $0x1a8] sm:$0xff]  ;;  %v540_v1 = vld [vmem:[%s911_s7 + $0x178] sm:$0xff] }
  0x8a   : > { %v234_v52 = vadd.f32 %v233_v21, %v226_v9  ;;  %v241_v53 = vadd.f32 %v240_v28, %v227_v10  ;;  %v323_v55 = vmul.f32 %v534_v35, %v534_v35  ;;  %v338_v56 = vadd.f32 %v337_v43, %v319_v32  ;;  %v547_v3 = vld [vmem:[%s911_s7 + $0x1b0] sm:$0xff]  ;;  %v548_v11 = vld [vmem:[%s911_s7 + $0x1b8] sm:$0xff]  ;;  %v549_v14 = vld [vmem:[%s911_s7 + $0x1c0] sm:$0xff] }
  0x8b   : > { %v324_v58 = vmul.f32 %v535_v40, %v535_v40  ;;  %v325_v59 = vmul.f32 %v536_v41, %v536_v41  ;;  %v332_v60 = vadd.f32 %v331_v48, %v320_v36  ;;  %v365_v63 = vmul.f32 %v541_v44, %v541_v44  ;;  %v550_v15 = vld [vmem:[%s911_s7 + $0x1c8] sm:$0xff]  ;;  %v551_v28 = vld [vmem:[%s911_s7 + $0x1d0] sm:$0xff]  ;;  %v552_v29 = vld [vmem:[%s911_s7 + $0x1d8] sm:$0xff] }
  0x8c   : > { %v339_v2 = vadd.f32 %v338_v56, %v321_v42  ;;  %v366_v4 = vmul.f32 %v542_v49, %v542_v49  ;;  %v367_v5 = vmul.f32 %v543_v50, %v543_v50  ;;  %v368_v6 = vmul.f32 %v544_v51, %v544_v51  ;;  %v554_v35 = vld [vmem:[%s911_s7 + $0x1e8] sm:$0xff] }
  0x8d   : > { %v284_v7 = vadd.f32 %v283_v45, %v275_v33  ;;  %v291_v8 = vadd.f32 %v290_v46, %v276_v34  ;;  %v326_v9 = vmul.f32 %v537_v54, %v537_v54  ;;  %v333_v10 = vadd.f32 %v332_v60, %v322_v47  ;;  %v553_v34 = vld [vmem:[%s911_s7 + $0x1e0] sm:$0xff] }
  0x8e   : > { %v327_v12 = vmul.f32 %v538_v57, %v538_v57  ;;  %v340_v13 = vadd.f32 %v339_v2, %v323_v55  ;;  %v369_v16 = vmul.f32 %v545_v61, %v545_v61  ;;  %v370_v17 = vmul.f32 %v546_v62, %v546_v62 }
  0x8f   : > { %v328_v18 = vmul.f32 %v539_v0, %v539_v0  ;;  %v329_v19 = vmul.f32 %v540_v1, %v540_v1  ;;  %v334_v20 = vadd.f32 %v333_v10, %v324_v58  ;;  %v371_v21 = vmul.f32 %v547_v3, %v547_v3 }
  0x90   : > { %v341_v22 = vadd.f32 %v340_v13, %v325_v59  ;;  %v372_v23 = vmul.f32 %v548_v11, %v548_v11  ;;  %v381_v24 = vadd.f32 %v367_v5, %v365_v63  ;;  %v388_v25 = vadd.f32 %v368_v6, %v366_v4 }
  0x91   : > { %v285_v26 = vadd.f32 %v284_v7, %v277_v38  ;;  %v292_v27 = vadd.f32 %v291_v8, %v278_v39  ;;  %v373_v30 = vmul.f32 %v549_v14, %v549_v14  ;;  %v374_v31 = vmul.f32 %v550_v15, %v550_v15  ;;  %v555_v38 = vld [vmem:[%s911_s7 + $0x1f0] sm:$0xff]  ;;  %v556_v39 = vld [vmem:[%s911_s7 + $0x1f8] sm:$0xff] }
  0x92   : > { %v335_v32 = vadd.f32 %v334_v20, %v326_v9  ;;  %v342_v33 = vadd.f32 %v341_v22, %v327_v12  ;;  %v382_v36 = vadd.f32 %v381_v24, %v369_v16  ;;  %v389_v37 = vadd.f32 %v388_v25, %v370_v17  ;;  %v423_v17 = vld [vmem:[%s923_s9] sm:$0x1] (!%p557_p4) }
  0x93   : > { %v375_v40 = vmul.f32 %v551_v28, %v551_v28  ;;  %v376_v41 = vmul.f32 %v552_v29, %v552_v29  ;;  %v293_v44 = vadd.f32 %v285_v26, %v234_v52  ;;  %v294_v45 = vadd.f32 %v292_v27, %v241_v53  ;;  %v191_v52 = vld [vmem:[#allocation2] sm:$0xff]  ;;  %v192_v53 = vld [vmem:[#allocation2 + $0x8] sm:$0xff] }
  0x94   : > { %v383_v42 = vadd.f32 %v382_v36, %v371_v21  ;;  %v390_v43 = vadd.f32 %v389_v37, %v372_v23  ;;  %v377_v46 = vmul.f32 %v553_v34, %v553_v34  ;;  %v378_v47 = vmul.f32 %v554_v35, %v554_v35 }
  0x95   : > { %v336_v48 = vadd.f32 %v335_v32, %v328_v18  ;;  %v343_v49 = vadd.f32 %v342_v33, %v329_v19  ;;  %v379_v54 = vmul.f32 %v555_v38, %v555_v38  ;;  %v380_v55 = vmul.f32 %v556_v39, %v556_v39 }
  0x96   : > { %v384_v50 = vadd.f32 %v383_v42, %v373_v30  ;;  %v391_v51 = vadd.f32 %v390_v43, %v374_v31  ;;  %v418_v14 = vlaneseq (!%p557_p4)  ;;  %v421_v16 = vstv (!%p557_p4), %s420_s2 }
  0x97   : > { %v344_v58 = vadd.f32 %v336_v48, %v293_v44  ;;  %v345_v59 = vadd.f32 %v343_v49, %v294_v45 }
  0x98   : > { %v385_v56 = vadd.f32 %v384_v50, %v375_v40  ;;  %v392_v57 = vadd.f32 %v391_v51, %v376_v41  ;;  %v419_v15 = vand.u32 (!%p557_p4), 127, %v418_v14 }
  0x9a   : > { %v386_v60 = vadd.f32 %v385_v56, %v377_v46  ;;  %v393_v61 = vadd.f32 %v392_v57, %v378_v47  ;;  %vm422_vm1 = vcmp.eq.s32.totalorder (!%p557_p4), %v419_v15, %v421_v16 }
  0x9c   : > { %v387_v62 = vadd.f32 %v386_v60, %v379_v54  ;;  %v394_v63 = vadd.f32 %v393_v61, %v380_v55  ;;  %405 = sbr.rel (%p557_p4) target bundleno = 379 (0x17b), region = 40 }
  0x9e   : > { %v395_v0 = vadd.f32 %v387_v62, %v344_v58  ;;  %v396_v1 = vadd.f32 %v394_v63, %v345_v59 }
  0xa0   : > { %v397_v2 = vadd.f32 %v395_v0, %v191_v52  ;;  %v398_v3 = vadd.f32 %v396_v1, %v192_v53 }
  0xa2   : > { %399 = vst [vmem:[#allocation2] sm:$0xff] %v397_v2  ;;  %400 = vst [vmem:[#allocation2 + $0x8] sm:$0xff] %v398_v3 }
  0xa9   : > { %v406_v4 = vld [vmem:[#allocation2] sm:$0xff]  ;;  %v407_v5 = vld [vmem:[#allocation2 + $0x8] sm:$0xff] }
  0xaa   : > { %v408_v6 = vadd.f32 %v407_v5, %v406_v4 }
  0xac   : > { %409 = vadd.xlane.f32.xlu0 %v408_v6 }
 0x139   : > { %v410_v7 = vpop.xlane.xlu0 %409 }
 0x13a   : > { %v411_v8 = vrot.slane %v410_v7, 4 }
 0x13c   : > { %v412_v9 = vadd.f32 %v411_v8, %v410_v7 }
 0x13e   : > { %v413_v10 = vrot.slane %v412_v9, 2 }
 0x140   : > { %v414_v11 = vadd.f32 %v413_v10, %v412_v9 }
 0x142   : > { %v415_v12 = vrot.slane %v414_v11, 1 }
 0x144   : > { %v416_v13 = vadd.f32 %v415_v12, %v414_v11 }
 0x146   : > { %562 = vpush %v416_v13 }
 0x177   : > { %s563_s3 = spop %562 }
 0x178   : > { %v424_v18 = vstv %s563_s3 }
 0x179   : > { %v425_v19 = vsel %vm422_vm1, %v424_v18, %v423_v17 }
 0x17a   : > { %427 = vst.msk [vmem:[%s923_s9] sm:$0x1] %vm182_vm0, %v425_v19 }
 0x17b PF: > { %s36_s14 = sadd.s32 1, %s761_s14   ;;  %s1028_s3 = smov %s745_s10 }
 0x17c   : > { %p33_p8 = scmp.ge.s32.totalorder %s36_s14, 4   ;;  %s1029_s10 = smov %s749_s11 }
 0x17d   : > { %s1030_s11 = smov %s864_s26  ;;  %s1031_s12 = smov %s757_s13 }
 0x17e   : > { %s1032_s13 = smov %s1034_s15  ;;  %35 = sbr.rel (!%p33_p8) target bundleno = 50 (0x32), region = 80 }
 0x185   :  { %445 = vsyncpa [#allocation9], 1 }
 0x186   :  { %447 = vsyncpa [#allocation9 + $0x1], 1 }

// kernel: _regularization_loss.3
= control target key start
LH: loop header
LB: loop body
LE: loop exit
PB: predicated region body
PF: predicated region fallthrough
CT: control target
= control target key end

     0   :  { %s532_s0 = inlined_call_operand.vmem [shape: s32[4], index: 0, kind: input, shape index: {}, may-alias: {0,1}]   ;;  %s533_s4 = inlined_call_operand.vmem [shape: f32[24,128], index: 4, kind: input, shape index: {}]   ;;  %s534_s5 = inlined_call_operand.vmem [shape: f32[2,1,3], index: 5, kind: output, shape index: {}]   ;;  %s535_s1 = inlined_call_operand.vmem [shape: s32[4], index: 1, kind: input, shape index: {}, may-alias: {0,1}]   ;;  %s536_s2 = inlined_call_operand.vmem [shape: s32[4], index: 2, kind: input, shape index: {}]   ;;  %s537_s3 = inlined_call_operand.vmem [shape: s32[4], index: 3, kind: input, shape index: {}]  }
   0x1   :  { %s10_s20 = sshll.u32 %s532_s0, 4  ;;  %s14_s23 = sshll.u32 %s535_s1, 4  ;;  %s11_s20 = int_to_ptr.vmem [resolvable:$true] %s10_s20  ;;  %s15_s23 = int_to_ptr.vmem [resolvable:$true] %s14_s23 }
   0x2   :  { %s332_s24 = scalar_lea.vmem %s11_s20, 16  ;;  %p337_p1 = scmp.lt.s32.totalorder %s11_s20, %s11_s20 }
   0x3   :  { %p333_p0 = scmp.ne.s32.totalorder %s11_s20, %s332_s24  ;;  %p338_p2 = scmp.lt.s32.totalorder %s332_s24, %s332_s24 }
   0x5   :  { %p339_p3 = por %p338_p2, %p337_p1 }
   0x7   :  { %p340_p4 = pnand %p339_p3, %p333_p0 }
   0x9   :  { %343 = shalt.err (!%p340_p4)  }
   0xa   :  { %s422_s25 = smov [#allocation4]   ;;  %s344_s26 = scalar_lea.vmem %s15_s23, 16 }
   0xb   :  { %13 = dma.vmem_to_smem %s11_s20, 16, %s422_s25, [#allocation3] }
   0xc   :  { %p345_p5 = scmp.ne.s32.totalorder %s15_s23, %s344_s26  ;;  %p349_p6 = scmp.lt.s32.totalorder %s15_s23, %s15_s23 }
   0xd   :  { %p350_p7 = scmp.lt.s32.totalorder %s344_s26, %s344_s26 }
   0xf   :  { %p351_p8 = por %p350_p7, %p349_p6 }
  0x11   :  { %p352_p9 = pnand %p351_p8, %p345_p5 }
  0x13   :  { %355 = shalt.err (!%p352_p9)  }
  0x14   :  { %s423_s0 = smov [#allocation5]   ;;  %s18_s28 = sshll.u32 %s536_s2, 4  ;;  %s19_s28 = int_to_ptr.vmem [resolvable:$true] %s18_s28 }
  0x15   :  { %17 = dma.vmem_to_smem %s15_s23, 16, %s423_s0, [#allocation3] }
  0x16   :  { %s22_s6 = sshll.u32 %s537_s3, 4  ;;  %s356_s7 = scalar_lea.vmem %s19_s28, 16  ;;  %s23_s6 = int_to_ptr.vmem [resolvable:$true] %s22_s6 }
  0x17   :  { %p357_p10 = scmp.ne.s32.totalorder %s19_s28, %s356_s7  ;;  %p361_p11 = scmp.lt.s32.totalorder %s19_s28, %s19_s28 }
  0x18   :  { %p362_p12 = scmp.lt.s32.totalorder %s356_s7, %s356_s7 }
  0x1a   :  { %p363_p13 = por %p362_p12, %p361_p11 }
  0x1c   :  { %p364_p0 = pnand %p363_p13, %p357_p10 }
  0x1e   :  { %367 = shalt.err (!%p364_p0)  }
  0x1f   :  { %s424_s8 = smov [#allocation6]   ;;  %s368_s9 = scalar_lea.vmem %s23_s6, 16 }
  0x20   :  { %21 = dma.vmem_to_smem %s19_s28, 16, %s424_s8, [#allocation3] }
  0x21   :  { %p369_p1 = scmp.ne.s32.totalorder %s23_s6, %s368_s9  ;;  %p373_p2 = scmp.lt.s32.totalorder %s23_s6, %s23_s6 }
  0x22   :  { %p374_p3 = scmp.lt.s32.totalorder %s368_s9, %s368_s9 }
  0x24   :  { %p375_p4 = por %p374_p3, %p373_p2 }
  0x26   :  { %p376_p5 = pnand %p375_p4, %p369_p1 }
  0x28   :  { %379 = shalt.err (!%p376_p5)  }
  0x29   :  { %s425_s2 = smov [#allocation7]  }
  0x2a   :  { %25 = dma.vmem_to_smem %s23_s6, 16, %s425_s2, [#allocation3] }
  0x2b   :  { %400 = dma.done.wait [#allocation3], 64 }
  0x2c   :  { %401 = vsyncadd [#allocation3], 4294967232 }
  0x2d   :  { %27 = sfence }
  0x2e   :  { %s470_s3 = smov 0   ;;  %s472_s10 = smov 0  }
  0x2f   :  { %s474_s11 = smov 0   ;;  %s476_s12 = smov 0  }
  0x30   :  { %s478_s13 = smov 0  }
  0x31 LB: > { %s42_s14 = sadd.s32 1, %s412_s11  ;;  %s45_s15 = sadd.s32 1, %s416_s12  ;;  %s420_s13 = sphi %s478_s13, %s33_s13   ;;  %s416_s12 = sphi %s476_s12, %s541_s12   ;;  %s412_s11 = sphi %s474_s11, %s540_s11   ;;  %s408_s10 = sphi %s472_s10, %s539_s10   ;;  %s404_s3 = sphi %s470_s3, %s538_s3  }
  0x32   : > { %p43_p6 = scmp.ge.s32.totalorder %s42_s14, 2  ;;  %p275_p7 = scmp.ge.s32.totalorder %s420_s13, 1 }
  0x33   : > { %p132_p8 = scmp.lt.s32.totalorder %s420_s13, 5 }
  0x34   : > { %s543_s14 = smov (%p43_p6, %s42_s14), 0  ;;  %s545_s15 = smov (!%p43_p6, %s45_s15), %s416_s12 }
  0x35   : > { %p133_p9 = pnand %p275_p7, %p132_p8  ;;  %p47_p10 = scmp.ge.s32.totalorder %s545_s15, 2 }
  0x36   : > { %s276_s16 = sshll.u32 (!%p133_p9), %s408_s10, 1  ;;  %p162_p11 = scmp.lt.s32.totalorder (!%p133_p9), %s408_s10, 1 }
  0x37   : > { %s547_s15 = smov (%p47_p10, %s545_s15), 0  ;;  %136 = sbr.rel (%p133_p9) target bundleno = 305 (0x131), region = 24 }
  0x38   : > { %s500_s17 = sadd.s32 (!%p133_p9), %s404_s3, %s276_s16  ;;  %p279_p13 = scmp.ne.s32.totalorder (!%p133_p9), %s404_s3, 0 }
  0x39   : > { %s154_s18 = sld [smem:[#allocation4 + %s500_s17]] (!%p133_p9) }
  0x3e   : > { %s549_s10 = smov (!%p162_p11, %s408_s10), 1  ;;  %170 = sbr.rel (%p279_p13) target bundleno = 69 (0x45), region = 28 }
  0x3f   : > { %s506_s21 = scalar_lea.vmem %s534_s5, %s549_s10  ;;  %p155_p12 = scmp.lt.s32.totalorder %s154_s18, 2  ;;  %vm171_vm0 = vcmask (!%p279_p13), 16384   ;;  %v426_v0 = vmov (!%p279_p13), 0.0  }
  0x40   : > { %172 = vst.msk [vmem:[%s506_s21] sm:$0x1] (!%p279_p13), %vm171_vm0, %v426_v0 }
  0x41   : > { %s551_s18 = smov (!%p155_p12, %s154_s18), 2 }
  0x42   : > { %s277_s22 = sshll.u32 %s551_s18, 3 }
  0x43   : > { %s158_s25 = scalar_lea.vmem %s533_s4, %s277_s22 }
  0x45 PF: > { %s173_s26 = sld [smem:[#allocation6 + %s500_s17]] }
  0x4b   : > { %p280_p0 = scmp.ne.s32.totalorder %s173_s26, 1 }
  0x4c   : > { %v427_v1 = vmov (!%p280_p0), 0.0  }
  0x4d   : > { %177 = sbr.rel (%p280_p0) target bundleno = 84 (0x54), region = 32  ;;  %178 = vst [vmem:[#allocation2] sm:$0xff] (!%p280_p0), %v427_v1 }
  0x54 PF: > { %v179_v2 = vld [vmem:[#allocation2] sm:$0xff]  ;;  %s186_s0 = sld [smem:[#allocation7 + %s500_s17]] }
  0x55   : > { %v180_v3 = vld [vmem:[%s158_s25] sm:$0xff] }
  0x56   : > { %v181_v4 = vmul.f32 %v180_v3, %v180_v3 }
  0x58   : > { %v184_v5 = vadd.f32 %v181_v4, %v179_v2 }
  0x5a   : > { %185 = vst [vmem:[#allocation2] sm:$0xff] %v184_v5  ;;  %p281_p1 = scmp.ne.s32.totalorder %s186_s0, 1 }
  0x5b   : > { %s203_s1 = sld [smem:[#allocation5 + %s500_s17]] (!%p281_p1)  ;;  %v201_v14 = vlaneseq (!%p281_p1)  ;;  %v206_v17 = vld [vmem:[%s506_s21] sm:$0x1] (!%p281_p1)  ;;  %vm209_vm2 = vcmask (!%p281_p1), 16384  }
  0x5c   : > { %190 = sbr.rel (%p281_p1) target bundleno = 305 (0x131), region = 36 }
  0x5d   : > { %v202_v15 = vand.u32 (!%p281_p1), 127, %v201_v14 }
  0x61   : > { %v191_v6 = vld [vmem:[#allocation2] sm:$0xff] (!%p281_p1)  ;;  %v204_v16 = vstv (!%p281_p1), %s203_s1 }
  0x62   : > { %192 = vadd.xlane.f32.xlu0 (!%p281_p1), %v191_v6  ;;  %vm205_vm1 = vcmp.eq.s32.totalorder (!%p281_p1), %v202_v15, %v204_v16 }
  0xef   : > { %v193_v7 = vpop.xlane.xlu0 %192 }
  0xf0   : > { %v194_v8 = vrot.slane %v193_v7, 4 }
  0xf2   : > { %v195_v9 = vadd.f32 %v194_v8, %v193_v7 }
  0xf4   : > { %v196_v10 = vrot.slane %v195_v9, 2 }
  0xf6   : > { %v197_v11 = vadd.f32 %v196_v10, %v195_v9 }
  0xf8   : > { %v198_v12 = vrot.slane %v197_v11, 1 }
  0xfa   : > { %v199_v13 = vadd.f32 %v198_v12, %v197_v11 }
  0xfc   : > { %284 = vpush %v199_v13 }
 0x12d   : > { %s285_s27 = spop %284 }
 0x12e   : > { %v207_v18 = vstv %s285_s27 }
 0x12f   : > { %v208_v19 = vsel %vm205_vm1, %v207_v18, %v206_v17 }
 0x130   : > { %210 = vst.msk [vmem:[%s506_s21] sm:$0x1] %vm209_vm2, %v208_v19 }
 0x131 PF: > { %s33_s13 = sadd.s32 1, %s420_s13   ;;  %s538_s3 = smov %s412_s11 }
 0x132   : > { %p30_p2 = scmp.ge.s32.totalorder %s33_s13, 6   ;;  %s539_s10 = smov %s416_s12 }
 0x133   : > { %s540_s11 = smov %s543_s14  ;;  %s541_s12 = smov %s547_s15 }
 0x134   :  { %32 = sbr.rel (!%p30_p2) target bundleno = 49 (0x31), region = 66 }

</bundles_post_ra>
